<compile_context>
chip_gen: v5e
topology: v5e:2x2
jax: 0.10.0
libtpu: 0.0.40
codegen_flags: <defaults>
</compile_context>

<pallas_src>
import functools

import jax
import jax.numpy as jnp
import numpy as np
from jax.experimental import pallas as pl
from jax.experimental.pallas import tpu as pltpu

NUM_CLASSES = 6
SMOOTH = 0.1
LANES = 128
_N_STATS = 3                          # intersection / pred / target
_OUT_ROWS = _N_STATS * NUM_CLASSES    # 18


def _dice_counts_kernel(x_ref, t_ref, o_ref, *, num_channels, tile_rows,
                        valid_len, needs_mask):
    # x_ref: (1, C, tile_rows, 128) logits, native dtype
    # t_ref: (1, tile_rows, 128)    int32 labels
    # o_ref: (1, 18, 128)           int32 counts, resident across the row axis
    r_id = pl.program_id(1)

    @pl.when(r_id == 0)
    def _init():
        o_ref[...] = jnp.zeros_like(o_ref)

    # argmax over ALL channels, first-occurrence tie-break (matches torch).
    best = x_ref[0, 0]                           # (tile_rows, 128) native dtype
    labels = jnp.zeros(best.shape, jnp.int32)
    for ch in range(1, num_channels):
        cur = x_ref[0, ch]
        take = cur > best
        labels = jnp.where(take, jnp.int32(ch), labels)
        best = jnp.where(take, cur, best)

    t = t_ref[0]                                 # (tile_rows, 128) int32

    if needs_mask:
        # Exclude pixels past the true H*W extent: padded tail (corner case)
        # and/or the unspecified region of a ragged last row-tile.  Only
        # traced when such pixels can exist.
        row_i = jax.lax.broadcasted_iota(jnp.int32, (tile_rows, LANES), 0)
        lane_i = jax.lax.broadcasted_iota(jnp.int32, (tile_rows, LANES), 1)
        pos = (r_id * tile_rows + row_i) * LANES + lane_i
        valid = pos < valid_len
        labels = jnp.where(valid, labels, jnp.int32(-1))
        t = jnp.where(valid, t, jnp.int32(-2))

    match = labels == t                          # pred_c & tgt_c helper
    sums = []                                    # (output row, (1,128) int32)
    for cls in range(NUM_CLASSES):
        pred_c = labels == cls
        tgt_c = t == cls
        inter_c = jnp.logical_and(tgt_c, match)
        sums.append((0 * NUM_CLASSES + cls,
                     jnp.sum(inter_c.astype(jnp.int32), axis=0, keepdims=True)))
        sums.append((1 * NUM_CLASSES + cls,
                     jnp.sum(pred_c.astype(jnp.int32), axis=0, keepdims=True)))
        sums.append((2 * NUM_CLASSES + cls,
                     jnp.sum(tgt_c.astype(jnp.int32), axis=0, keepdims=True)))

    # Assemble one (18,128) partial and do a single whole-tile RMW on o_ref
    # (avoids 18 serialized single-sublane read-modify-writes).
    row_ids = jax.lax.broadcasted_iota(jnp.int32, (_OUT_ROWS, LANES), 0)
    partial = jnp.zeros((_OUT_ROWS, LANES), jnp.int32)
    for row, vec in sums:
        partial = partial + jnp.where(row_ids == row, vec, 0)
    o_ref[0] = o_ref[0] + partial


def _choose_tile_rows(num_channels, rows, x_itemsize,
                      max_tile_rows=1024, block_budget_bytes=8 * 1024 * 1024):
    # One (logits + targets) block <= ~8 MiB so the double-buffered footprint
    # plus kernel temporaries stays inside the 32 MiB scoped VMEM we request
    # and comfortably below v7x's 64 MiB physical VMEM.
    bytes_per_row = LANES * (num_channels * x_itemsize + 4)
    max_rows = max(8, block_budget_bytes // bytes_per_row)
    tr = int(min(max_tile_rows, max_rows))
    tr = max(8, (tr // 8) * 8)
    if tr >= rows:
        return rows                              # single row-tile, full dim
    return tr


def dice_loss(inputs, targets, *, max_tile_rows=1024):
    """inputs: (N, C, H, W) float logits; targets: (N, H, W) integer labels."""
    n, c, h, w = inputs.shape
    l = h * w

    # Pure trailing-dim reshapes of the NCHW layout; logits keep their native
    # dtype (no f32 upcast, no HBM transpose / full-array pad pass).
    x = inputs.reshape(n, c, l)
    t = targets.reshape(n, l).astype(jnp.int32)

    pad = (-l) % LANES
    if pad:
        # Corner case (H*W not a multiple of 128): a copy is unavoidable to get
        # a lane-dense (rows, 128) view; pad only to the next 128 multiple.
        # TODO(synk): handle the sub-128 tail with a manual-DMA path to avoid
        # even this copy.
        x = jnp.pad(x, ((0, 0), (0, 0), (0, pad)))
        t = jnp.pad(t, ((0, 0), (0, pad)))
    rows = (l + pad) // LANES
    x = x.reshape(n, c, rows, LANES)
    t = t.reshape(n, rows, LANES)

    tile_rows = _choose_tile_rows(c, rows, x.dtype.itemsize,
                                  max_tile_rows=max_tile_rows)
    num_row_tiles = pl.cdiv(rows, tile_rows)
    # Mask needed for padded pixels and/or the ragged last row-tile (which is
    # never padded in HBM -- its out-of-range part is read as-is and masked).
    needs_mask = (pad > 0) or (rows % tile_rows != 0)

    kernel = functools.partial(
        _dice_counts_kernel, num_channels=c, tile_rows=tile_rows,
        valid_len=l, needs_mask=needs_mask)

    counts = pl.pallas_call(
        kernel,
        out_shape=jax.ShapeDtypeStruct((n, _OUT_ROWS, LANES), jnp.int32),
        grid_spec=pltpu.PrefetchScalarGridSpec(
            num_scalar_prefetch=0,
            grid=(n, num_row_tiles),
            in_specs=[
                pl.BlockSpec((1, c, tile_rows, LANES),
                             lambda ni, ri: (ni, 0, ri, 0)),
                pl.BlockSpec((1, tile_rows, LANES),
                             lambda ni, ri: (ni, ri, 0)),
            ],
            out_specs=pl.BlockSpec((1, _OUT_ROWS, LANES),
                                   lambda ni, ri: (ni, 0, 0)),
        ),
        compiler_params=pltpu.CompilerParams(
            dimension_semantics=("parallel", "arbitrary"),
            vmem_limit_bytes=32 * 1024 * 1024),
    )(x, t)

    # Finalize the 6-class dice + mean in plain JAX from the exact int counts.
    # NOTE: int32 sums are exact for images with < ~2.1e9 pixels per class.
    totals = jnp.sum(counts, axis=(0, 2)).reshape(_N_STATS, NUM_CLASSES)
    totals = totals.astype(jnp.float32)
    inter, psum, tsum = totals[0], totals[1], totals[2]
    dice = (2.0 * inter + SMOOTH) / (psum + tsum + SMOOTH)
    return 1.0 - jnp.mean(dice)


def _dice_loss_ref(inputs, targets):
    labels = jnp.argmax(inputs, axis=1)
    dices = []
    for cls in range(NUM_CLASSES):
        pred = (labels == cls).astype(jnp.float32)
        tgt = (targets == cls).astype(jnp.float32)
        inter = jnp.sum(pred * tgt)
        dices.append((2.0 * inter + SMOOTH) /
                     (jnp.sum(pred) + jnp.sum(tgt) + SMOOTH))
    return 1.0 - sum(dices) / float(NUM_CLASSES)


if __name__ == "__main__":
    key = jax.random.PRNGKey(0)
    k1, k2, k3, k4, k5, k6 = jax.random.split(key, 6)

    # Case 1: C == 6, H*W a multiple of 128 (no padding, no masking path).
    N, C, H, W = 2, NUM_CLASSES, 16, 16
    inputs = jax.random.normal(k1, (N, C, H, W), dtype=jnp.float32)
    targets = jax.random.randint(k2, (N, H, W), 0, NUM_CLASSES, dtype=jnp.int32)
    loss = dice_loss(inputs, targets)
    jax.block_until_ready(loss)
    ref = _dice_loss_ref(inputs, targets)
    assert np.allclose(np.asarray(loss), np.asarray(ref), rtol=1e-5, atol=1e-5), (
        f"mismatch (case 1): pallas={loss} ref={ref}")

    # Case 2: C > 6 and H*W not a multiple of 128 (argmax over all C + pad mask).
    N2, C2, H2, W2 = 2, 8, 10, 12
    inputs2 = jax.random.normal(k3, (N2, C2, H2, W2), dtype=jnp.float32)
    targets2 = jax.random.randint(k4, (N2, H2, W2), 0, NUM_CLASSES,
                                  dtype=jnp.int32)
    loss2 = dice_loss(inputs2, targets2)
    jax.block_until_ready(loss2)
    ref2 = _dice_loss_ref(inputs2, targets2)
    assert np.allclose(np.asarray(loss2), np.asarray(ref2), rtol=1e-5, atol=1e-5), (
        f"mismatch (case 2): pallas={loss2} ref={ref2}")

    # Case 3: multiple row-tiles with a ragged last tile and NO HBM padding of
    # the logits (small forced tile size exercises the resident accumulator +
    # ragged-grid masking path).
    N3, C3, H3, W3 = 2, NUM_CLASSES, 48, 48
    inputs3 = jax.random.normal(k5, (N3, C3, H3, W3), dtype=jnp.float32)
    targets3 = jax.random.randint(k6, (N3, H3, W3), 0, NUM_CLASSES,
                                  dtype=jnp.int32)
    loss3 = dice_loss(inputs3, targets3, max_tile_rows=8)
    jax.block_until_ready(loss3)
    ref3 = _dice_loss_ref(inputs3, targets3)
    assert np.allclose(np.asarray(loss3), np.asarray(ref3), rtol=1e-5, atol=1e-5), (
        f"mismatch (case 3): pallas={loss3} ref={ref3}")

    print("KERNEL_OK")
</pallas_src>

<mosaic_0001>
module attributes {stable_mosaic.version = 11 : i64} {
  func.func @_dice_counts_kernel(%arg0: i32, %arg1: i32, %arg2: memref<1x6x2x128xf32, #tpu.memory_space<vmem>>, %arg3: memref<1x2x128xi32, #tpu.memory_space<vmem>>, %arg4: memref<1x18x128xi32, #tpu.memory_space<vmem>>) attributes {dimension_semantics = [#tpu.dimension_semantics<parallel>, #tpu.dimension_semantics<arbitrary>], iteration_bounds = array<i64: 2, 1>, scalar_prefetch = 0 : i64, scratch_operands = 0 : i64, tpu.core_type = #tpu.core_type<tc>, window_params = [{transform_indices = @transform_0, window_bounds = array<i64: 1, 6, 2, 128>}, {transform_indices = @transform_1, window_bounds = array<i64: 1, 2, 128>}, {transform_indices = @transform_2, window_bounds = array<i64: 1, 18, 128>}]} {
    %c0_i32 = arith.constant 0 : i32
    %0 = arith.cmpi eq, %arg1, %c0_i32 : i32
    %1 = arith.extui %0 : i1 to i32
    %c0_i32_0 = arith.constant 0 : i32
    %2 = arith.cmpi ne, %1, %c0_i32_0 : i32
    scf.if %2 {
      %c0_i32_83 = arith.constant 0 : i32
      %256 = vector.broadcast %c0_i32_83 : i32 to vector<1x18x128xi32>
      %c0_84 = arith.constant 0 : index
      %c0_85 = arith.constant 0 : index
      %c0_86 = arith.constant 0 : index
      %257 = vector.load %arg4[%c0_84, %c0_85, %c0_86] : memref<1x18x128xi32, #tpu.memory_space<vmem>>, vector<1x18x128xi32>
      tpu.vector_store %arg4[%c0_84, %c0_85, %c0_86], %256 {strides = array<i32>} : memref<1x18x128xi32, #tpu.memory_space<vmem>>, vector<1x18x128xi32>,
    } else {
    }
    %c0 = arith.constant 0 : index
    %c0_1 = arith.constant 0 : index
    %c0_2 = arith.constant 0 : index
    %c0_3 = arith.constant 0 : index
    %3 = vector.load %arg2[%c0, %c0_1, %c0_2, %c0_3] : memref<1x6x2x128xf32, #tpu.memory_space<vmem>>, vector<1x1x2x128xf32>
    %4 = vector.shape_cast %3 : vector<1x1x2x128xf32> to vector<2x128xf32>
    %c0_i32_4 = arith.constant 0 : i32
    %5 = vector.broadcast %c0_i32_4 : i32 to vector<2x128xi32>
    %c0_5 = arith.constant 0 : index
    %c1 = arith.constant 1 : index
    %c0_6 = arith.constant 0 : index
    %c0_7 = arith.constant 0 : index
    %6 = vector.load %arg2[%c0_5, %c1, %c0_6, %c0_7] : memref<1x6x2x128xf32, #tpu.memory_space<vmem>>, vector<1x1x2x128xf32>
    %7 = vector.shape_cast %6 : vector<1x1x2x128xf32> to vector<2x128xf32>
    %8 = arith.cmpf ogt, %7, %4 : vector<2x128xf32>
    %c1_i32 = arith.constant 1 : i32
    %9 = vector.broadcast %c1_i32 : i32 to vector<2x128xi32>
    %10 = arith.select %8, %9, %5 : vector<2x128xi1>, vector<2x128xi32>
    %11 = arith.select %8, %7, %4 : vector<2x128xi1>, vector<2x128xf32>
    %c0_8 = arith.constant 0 : index
    %c2 = arith.constant 2 : index
    %c0_9 = arith.constant 0 : index
    %c0_10 = arith.constant 0 : index
    %12 = vector.load %arg2[%c0_8, %c2, %c0_9, %c0_10] : memref<1x6x2x128xf32, #tpu.memory_space<vmem>>, vector<1x1x2x128xf32>
    %13 = vector.shape_cast %12 : vector<1x1x2x128xf32> to vector<2x128xf32>
    %14 = arith.cmpf ogt, %13, %11 : vector<2x128xf32>
    %c2_i32 = arith.constant 2 : i32
    %15 = vector.broadcast %c2_i32 : i32 to vector<2x128xi32>
    %16 = arith.select %14, %15, %10 : vector<2x128xi1>, vector<2x128xi32>
    %17 = arith.select %14, %13, %11 : vector<2x128xi1>, vector<2x128xf32>
    %c0_11 = arith.constant 0 : index
    %c3 = arith.constant 3 : index
    %c0_12 = arith.constant 0 : index
    %c0_13 = arith.constant 0 : index
    %18 = vector.load %arg2[%c0_11, %c3, %c0_12, %c0_13] : memref<1x6x2x128xf32, #tpu.memory_space<vmem>>, vector<1x1x2x128xf32>
    %19 = vector.shape_cast %18 : vector<1x1x2x128xf32> to vector<2x128xf32>
    %20 = arith.cmpf ogt, %19, %17 : vector<2x128xf32>
    %c3_i32 = arith.constant 3 : i32
    %21 = vector.broadcast %c3_i32 : i32 to vector<2x128xi32>
    %22 = arith.select %20, %21, %16 : vector<2x128xi1>, vector<2x128xi32>
    %23 = arith.select %20, %19, %17 : vector<2x128xi1>, vector<2x128xf32>
    %c0_14 = arith.constant 0 : index
    %c4 = arith.constant 4 : index
    %c0_15 = arith.constant 0 : index
    %c0_16 = arith.constant 0 : index
    %24 = vector.load %arg2[%c0_14, %c4, %c0_15, %c0_16] : memref<1x6x2x128xf32, #tpu.memory_space<vmem>>, vector<1x1x2x128xf32>
    %25 = vector.shape_cast %24 : vector<1x1x2x128xf32> to vector<2x128xf32>
    %26 = arith.cmpf ogt, %25, %23 : vector<2x128xf32>
    %c4_i32 = arith.constant 4 : i32
    %27 = vector.broadcast %c4_i32 : i32 to vector<2x128xi32>
    %28 = arith.select %26, %27, %22 : vector<2x128xi1>, vector<2x128xi32>
    %29 = arith.select %26, %25, %23 : vector<2x128xi1>, vector<2x128xf32>
    %c0_17 = arith.constant 0 : index
    %c5 = arith.constant 5 : index
    %c0_18 = arith.constant 0 : index
    %c0_19 = arith.constant 0 : index
    %30 = vector.load %arg2[%c0_17, %c5, %c0_18, %c0_19] : memref<1x6x2x128xf32, #tpu.memory_space<vmem>>, vector<1x1x2x128xf32>
    %31 = vector.shape_cast %30 : vector<1x1x2x128xf32> to vector<2x128xf32>
    %32 = arith.cmpf ogt, %31, %29 : vector<2x128xf32>
    %c5_i32 = arith.constant 5 : i32
    %33 = vector.broadcast %c5_i32 : i32 to vector<2x128xi32>
    %34 = arith.select %32, %33, %28 : vector<2x128xi1>, vector<2x128xi32>
    %c0_20 = arith.constant 0 : index
    %c0_21 = arith.constant 0 : index
    %c0_22 = arith.constant 0 : index
    %35 = vector.load %arg3[%c0_20, %c0_21, %c0_22] : memref<1x2x128xi32, #tpu.memory_space<vmem>>, vector<1x2x128xi32>
    %36 = vector.shape_cast %35 : vector<1x2x128xi32> to vector<2x128xi32>
    %37 = arith.cmpi eq, %34, %36 : vector<2x128xi32>
    %c0_i32_23 = arith.constant 0 : i32
    %38 = vector.broadcast %c0_i32_23 : i32 to vector<2x128xi32>
    %39 = arith.cmpi eq, %34, %38 : vector<2x128xi32>
    %c0_i32_24 = arith.constant 0 : i32
    %40 = vector.broadcast %c0_i32_24 : i32 to vector<2x128xi32>
    %41 = arith.cmpi eq, %36, %40 : vector<2x128xi32>
    %42 = arith.andi %41, %37 : vector<2x128xi1>
    %43 = arith.extui %42 : vector<2x128xi1> to vector<2x128xi32>
    %cst = arith.constant dense<0> : vector<128xi32>
    %44 = vector.multi_reduction <add>, %43, %cst [0] : vector<2x128xi32> to vector<128xi32>
    %45 = vector.shape_cast %44 : vector<128xi32> to vector<1x128xi32>
    %46 = arith.extui %39 : vector<2x128xi1> to vector<2x128xi32>
    %cst_25 = arith.constant dense<0> : vector<128xi32>
    %47 = vector.multi_reduction <add>, %46, %cst_25 [0] : vector<2x128xi32> to vector<128xi32>
    %48 = vector.shape_cast %47 : vector<128xi32> to vector<1x128xi32>
    %49 = arith.extui %41 : vector<2x128xi1> to vector<2x128xi32>
    %cst_26 = arith.constant dense<0> : vector<128xi32>
    %50 = vector.multi_reduction <add>, %49, %cst_26 [0] : vector<2x128xi32> to vector<128xi32>
    %51 = vector.shape_cast %50 : vector<128xi32> to vector<1x128xi32>
    %c1_i32_27 = arith.constant 1 : i32
    %52 = vector.broadcast %c1_i32_27 : i32 to vector<2x128xi32>
    %53 = arith.cmpi eq, %34, %52 : vector<2x128xi32>
    %c1_i32_28 = arith.constant 1 : i32
    %54 = vector.broadcast %c1_i32_28 : i32 to vector<2x128xi32>
    %55 = arith.cmpi eq, %36, %54 : vector<2x128xi32>
    %56 = arith.andi %55, %37 : vector<2x128xi1>
    %57 = arith.extui %56 : vector<2x128xi1> to vector<2x128xi32>
    %cst_29 = arith.constant dense<0> : vector<128xi32>
    %58 = vector.multi_reduction <add>, %57, %cst_29 [0] : vector<2x128xi32> to vector<128xi32>
    %59 = vector.shape_cast %58 : vector<128xi32> to vector<1x128xi32>
    %60 = arith.extui %53 : vector<2x128xi1> to vector<2x128xi32>
    %cst_30 = arith.constant dense<0> : vector<128xi32>
    %61 = vector.multi_reduction <add>, %60, %cst_30 [0] : vector<2x128xi32> to vector<128xi32>
    %62 = vector.shape_cast %61 : vector<128xi32> to vector<1x128xi32>
    %63 = arith.extui %55 : vector<2x128xi1> to vector<2x128xi32>
    %cst_31 = arith.constant dense<0> : vector<128xi32>
    %64 = vector.multi_reduction <add>, %63, %cst_31 [0] : vector<2x128xi32> to vector<128xi32>
    %65 = vector.shape_cast %64 : vector<128xi32> to vector<1x128xi32>
    %c2_i32_32 = arith.constant 2 : i32
    %66 = vector.broadcast %c2_i32_32 : i32 to vector<2x128xi32>
    %67 = arith.cmpi eq, %34, %66 : vector<2x128xi32>
    %c2_i32_33 = arith.constant 2 : i32
    %68 = vector.broadcast %c2_i32_33 : i32 to vector<2x128xi32>
    %69 = arith.cmpi eq, %36, %68 : vector<2x128xi32>
    %70 = arith.andi %69, %37 : vector<2x128xi1>
    %71 = arith.extui %70 : vector<2x128xi1> to vector<2x128xi32>
    %cst_34 = arith.constant dense<0> : vector<128xi32>
    %72 = vector.multi_reduction <add>, %71, %cst_34 [0] : vector<2x128xi32> to vector<128xi32>
    %73 = vector.shape_cast %72 : vector<128xi32> to vector<1x128xi32>
    %74 = arith.extui %67 : vector<2x128xi1> to vector<2x128xi32>
    %cst_35 = arith.constant dense<0> : vector<128xi32>
    %75 = vector.multi_reduction <add>, %74, %cst_35 [0] : vector<2x128xi32> to vector<128xi32>
    %76 = vector.shape_cast %75 : vector<128xi32> to vector<1x128xi32>
    %77 = arith.extui %69 : vector<2x128xi1> to vector<2x128xi32>
    %cst_36 = arith.constant dense<0> : vector<128xi32>
    %78 = vector.multi_reduction <add>, %77, %cst_36 [0] : vector<2x128xi32> to vector<128xi32>
    %79 = vector.shape_cast %78 : vector<128xi32> to vector<1x128xi32>
    %c3_i32_37 = arith.constant 3 : i32
    %80 = vector.broadcast %c3_i32_37 : i32 to vector<2x128xi32>
    %81 = arith.cmpi eq, %34, %80 : vector<2x128xi32>
    %c3_i32_38 = arith.constant 3 : i32
    %82 = vector.broadcast %c3_i32_38 : i32 to vector<2x128xi32>
    %83 = arith.cmpi eq, %36, %82 : vector<2x128xi32>
    %84 = arith.andi %83, %37 : vector<2x128xi1>
    %85 = arith.extui %84 : vector<2x128xi1> to vector<2x128xi32>
    %cst_39 = arith.constant dense<0> : vector<128xi32>
    %86 = vector.multi_reduction <add>, %85, %cst_39 [0] : vector<2x128xi32> to vector<128xi32>
    %87 = vector.shape_cast %86 : vector<128xi32> to vector<1x128xi32>
    %88 = arith.extui %81 : vector<2x128xi1> to vector<2x128xi32>
    %cst_40 = arith.constant dense<0> : vector<128xi32>
    %89 = vector.multi_reduction <add>, %88, %cst_40 [0] : vector<2x128xi32> to vector<128xi32>
    %90 = vector.shape_cast %89 : vector<128xi32> to vector<1x128xi32>
    %91 = arith.extui %83 : vector<2x128xi1> to vector<2x128xi32>
    %cst_41 = arith.constant dense<0> : vector<128xi32>
    %92 = vector.multi_reduction <add>, %91, %cst_41 [0] : vector<2x128xi32> to vector<128xi32>
    %93 = vector.shape_cast %92 : vector<128xi32> to vector<1x128xi32>
    %c4_i32_42 = arith.constant 4 : i32
    %94 = vector.broadcast %c4_i32_42 : i32 to vector<2x128xi32>
    %95 = arith.cmpi eq, %34, %94 : vector<2x128xi32>
    %c4_i32_43 = arith.constant 4 : i32
    %96 = vector.broadcast %c4_i32_43 : i32 to vector<2x128xi32>
    %97 = arith.cmpi eq, %36, %96 : vector<2x128xi32>
    %98 = arith.andi %97, %37 : vector<2x128xi1>
    %99 = arith.extui %98 : vector<2x128xi1> to vector<2x128xi32>
    %cst_44 = arith.constant dense<0> : vector<128xi32>
    %100 = vector.multi_reduction <add>, %99, %cst_44 [0] : vector<2x128xi32> to vector<128xi32>
    %101 = vector.shape_cast %100 : vector<128xi32> to vector<1x128xi32>
    %102 = arith.extui %95 : vector<2x128xi1> to vector<2x128xi32>
    %cst_45 = arith.constant dense<0> : vector<128xi32>
    %103 = vector.multi_reduction <add>, %102, %cst_45 [0] : vector<2x128xi32> to vector<128xi32>
    %104 = vector.shape_cast %103 : vector<128xi32> to vector<1x128xi32>
    %105 = arith.extui %97 : vector<2x128xi1> to vector<2x128xi32>
    %cst_46 = arith.constant dense<0> : vector<128xi32>
    %106 = vector.multi_reduction <add>, %105, %cst_46 [0] : vector<2x128xi32> to vector<128xi32>
    %107 = vector.shape_cast %106 : vector<128xi32> to vector<1x128xi32>
    %c5_i32_47 = arith.constant 5 : i32
    %108 = vector.broadcast %c5_i32_47 : i32 to vector<2x128xi32>
    %109 = arith.cmpi eq, %34, %108 : vector<2x128xi32>
    %c5_i32_48 = arith.constant 5 : i32
    %110 = vector.broadcast %c5_i32_48 : i32 to vector<2x128xi32>
    %111 = arith.cmpi eq, %36, %110 : vector<2x128xi32>
    %112 = arith.andi %111, %37 : vector<2x128xi1>
    %113 = arith.extui %112 : vector<2x128xi1> to vector<2x128xi32>
    %cst_49 = arith.constant dense<0> : vector<128xi32>
    %114 = vector.multi_reduction <add>, %113, %cst_49 [0] : vector<2x128xi32> to vector<128xi32>
    %115 = vector.shape_cast %114 : vector<128xi32> to vector<1x128xi32>
    %116 = arith.extui %109 : vector<2x128xi1> to vector<2x128xi32>
    %cst_50 = arith.constant dense<0> : vector<128xi32>
    %117 = vector.multi_reduction <add>, %116, %cst_50 [0] : vector<2x128xi32> to vector<128xi32>
    %118 = vector.shape_cast %117 : vector<128xi32> to vector<1x128xi32>
    %119 = arith.extui %111 : vector<2x128xi1> to vector<2x128xi32>
    %cst_51 = arith.constant dense<0> : vector<128xi32>
    %120 = vector.multi_reduction <add>, %119, %cst_51 [0] : vector<2x128xi32> to vector<128xi32>
    %121 = vector.shape_cast %120 : vector<128xi32> to vector<1x128xi32>
    %122 = tpu.iota {dimensions = array<i32: 0>} : vector<18x128xi32>
    %c0_i32_52 = arith.constant 0 : i32
    %123 = vector.broadcast %c0_i32_52 : i32 to vector<18x128xi32>
    %c0_i32_53 = arith.constant 0 : i32
    %124 = vector.broadcast %c0_i32_53 : i32 to vector<18x128xi32>
    %125 = arith.cmpi eq, %122, %124 : vector<18x128xi32>
    %c0_i32_54 = arith.constant 0 : i32
    %126 = vector.shape_cast %45 : vector<1x128xi32> to vector<1x128xi32>
    %127 = vector.broadcast %126 : vector<1x128xi32> to vector<18x128xi32>
    %128 = vector.broadcast %c0_i32_54 : i32 to vector<18x128xi32>
    %129 = arith.select %125, %127, %128 : vector<18x128xi1>, vector<18x128xi32>
    %130 = arith.addi %123, %129 : vector<18x128xi32>
    %c6_i32 = arith.constant 6 : i32
    %131 = vector.broadcast %c6_i32 : i32 to vector<18x128xi32>
    %132 = arith.cmpi eq, %122, %131 : vector<18x128xi32>
    %c0_i32_55 = arith.constant 0 : i32
    %133 = vector.shape_cast %48 : vector<1x128xi32> to vector<1x128xi32>
    %134 = vector.broadcast %133 : vector<1x128xi32> to vector<18x128xi32>
    %135 = vector.broadcast %c0_i32_55 : i32 to vector<18x128xi32>
    %136 = arith.select %132, %134, %135 : vector<18x128xi1>, vector<18x128xi32>
    %137 = arith.addi %130, %136 : vector<18x128xi32>
    %c12_i32 = arith.constant 12 : i32
    %138 = vector.broadcast %c12_i32 : i32 to vector<18x128xi32>
    %139 = arith.cmpi eq, %122, %138 : vector<18x128xi32>
    %c0_i32_56 = arith.constant 0 : i32
    %140 = vector.shape_cast %51 : vector<1x128xi32> to vector<1x128xi32>
    %141 = vector.broadcast %140 : vector<1x128xi32> to vector<18x128xi32>
    %142 = vector.broadcast %c0_i32_56 : i32 to vector<18x128xi32>
    %143 = arith.select %139, %141, %142 : vector<18x128xi1>, vector<18x128xi32>
    %144 = arith.addi %137, %143 : vector<18x128xi32>
    %c1_i32_57 = arith.constant 1 : i32
    %145 = vector.broadcast %c1_i32_57 : i32 to vector<18x128xi32>
    %146 = arith.cmpi eq, %122, %145 : vector<18x128xi32>
    %c0_i32_58 = arith.constant 0 : i32
    %147 = vector.shape_cast %59 : vector<1x128xi32> to vector<1x128xi32>
    %148 = vector.broadcast %147 : vector<1x128xi32> to vector<18x128xi32>
    %149 = vector.broadcast %c0_i32_58 : i32 to vector<18x128xi32>
    %150 = arith.select %146, %148, %149 : vector<18x128xi1>, vector<18x128xi32>
    %151 = arith.addi %144, %150 : vector<18x128xi32>
    %c7_i32 = arith.constant 7 : i32
    %152 = vector.broadcast %c7_i32 : i32 to vector<18x128xi32>
    %153 = arith.cmpi eq, %122, %152 : vector<18x128xi32>
    %c0_i32_59 = arith.constant 0 : i32
    %154 = vector.shape_cast %62 : vector<1x128xi32> to vector<1x128xi32>
    %155 = vector.broadcast %154 : vector<1x128xi32> to vector<18x128xi32>
    %156 = vector.broadcast %c0_i32_59 : i32 to vector<18x128xi32>
    %157 = arith.select %153, %155, %156 : vector<18x128xi1>, vector<18x128xi32>
    %158 = arith.addi %151, %157 : vector<18x128xi32>
    %c13_i32 = arith.constant 13 : i32
    %159 = vector.broadcast %c13_i32 : i32 to vector<18x128xi32>
    %160 = arith.cmpi eq, %122, %159 : vector<18x128xi32>
    %c0_i32_60 = arith.constant 0 : i32
    %161 = vector.shape_cast %65 : vector<1x128xi32> to vector<1x128xi32>
    %162 = vector.broadcast %161 : vector<1x128xi32> to vector<18x128xi32>
    %163 = vector.broadcast %c0_i32_60 : i32 to vector<18x128xi32>
    %164 = arith.select %160, %162, %163 : vector<18x128xi1>, vector<18x128xi32>
    %165 = arith.addi %158, %164 : vector<18x128xi32>
    %c2_i32_61 = arith.constant 2 : i32
    %166 = vector.broadcast %c2_i32_61 : i32 to vector<18x128xi32>
    %167 = arith.cmpi eq, %122, %166 : vector<18x128xi32>
    %c0_i32_62 = arith.constant 0 : i32
    %168 = vector.shape_cast %73 : vector<1x128xi32> to vector<1x128xi32>
    %169 = vector.broadcast %168 : vector<1x128xi32> to vector<18x128xi32>
    %170 = vector.broadcast %c0_i32_62 : i32 to vector<18x128xi32>
    %171 = arith.select %167, %169, %170 : vector<18x128xi1>, vector<18x128xi32>
    %172 = arith.addi %165, %171 : vector<18x128xi32>
    %c8_i32 = arith.constant 8 : i32
    %173 = vector.broadcast %c8_i32 : i32 to vector<18x128xi32>
    %174 = arith.cmpi eq, %122, %173 : vector<18x128xi32>
    %c0_i32_63 = arith.constant 0 : i32
    %175 = vector.shape_cast %76 : vector<1x128xi32> to vector<1x128xi32>
    %176 = vector.broadcast %175 : vector<1x128xi32> to vector<18x128xi32>
    %177 = vector.broadcast %c0_i32_63 : i32 to vector<18x128xi32>
    %178 = arith.select %174, %176, %177 : vector<18x128xi1>, vector<18x128xi32>
    %179 = arith.addi %172, %178 : vector<18x128xi32>
    %c14_i32 = arith.constant 14 : i32
    %180 = vector.broadcast %c14_i32 : i32 to vector<18x128xi32>
    %181 = arith.cmpi eq, %122, %180 : vector<18x128xi32>
    %c0_i32_64 = arith.constant 0 : i32
    %182 = vector.shape_cast %79 : vector<1x128xi32> to vector<1x128xi32>
    %183 = vector.broadcast %182 : vector<1x128xi32> to vector<18x128xi32>
    %184 = vector.broadcast %c0_i32_64 : i32 to vector<18x128xi32>
    %185 = arith.select %181, %183, %184 : vector<18x128xi1>, vector<18x128xi32>
    %186 = arith.addi %179, %185 : vector<18x128xi32>
    %c3_i32_65 = arith.constant 3 : i32
    %187 = vector.broadcast %c3_i32_65 : i32 to vector<18x128xi32>
    %188 = arith.cmpi eq, %122, %187 : vector<18x128xi32>
    %c0_i32_66 = arith.constant 0 : i32
    %189 = vector.shape_cast %87 : vector<1x128xi32> to vector<1x128xi32>
    %190 = vector.broadcast %189 : vector<1x128xi32> to vector<18x128xi32>
    %191 = vector.broadcast %c0_i32_66 : i32 to vector<18x128xi32>
    %192 = arith.select %188, %190, %191 : vector<18x128xi1>, vector<18x128xi32>
    %193 = arith.addi %186, %192 : vector<18x128xi32>
    %c9_i32 = arith.constant 9 : i32
    %194 = vector.broadcast %c9_i32 : i32 to vector<18x128xi32>
    %195 = arith.cmpi eq, %122, %194 : vector<18x128xi32>
    %c0_i32_67 = arith.constant 0 : i32
    %196 = vector.shape_cast %90 : vector<1x128xi32> to vector<1x128xi32>
    %197 = vector.broadcast %196 : vector<1x128xi32> to vector<18x128xi32>
    %198 = vector.broadcast %c0_i32_67 : i32 to vector<18x128xi32>
    %199 = arith.select %195, %197, %198 : vector<18x128xi1>, vector<18x128xi32>
    %200 = arith.addi %193, %199 : vector<18x128xi32>
    %c15_i32 = arith.constant 15 : i32
    %201 = vector.broadcast %c15_i32 : i32 to vector<18x128xi32>
    %202 = arith.cmpi eq, %122, %201 : vector<18x128xi32>
    %c0_i32_68 = arith.constant 0 : i32
    %203 = vector.shape_cast %93 : vector<1x128xi32> to vector<1x128xi32>
    %204 = vector.broadcast %203 : vector<1x128xi32> to vector<18x128xi32>
    %205 = vector.broadcast %c0_i32_68 : i32 to vector<18x128xi32>
    %206 = arith.select %202, %204, %205 : vector<18x128xi1>, vector<18x128xi32>
    %207 = arith.addi %200, %206 : vector<18x128xi32>
    %c4_i32_69 = arith.constant 4 : i32
    %208 = vector.broadcast %c4_i32_69 : i32 to vector<18x128xi32>
    %209 = arith.cmpi eq, %122, %208 : vector<18x128xi32>
    %c0_i32_70 = arith.constant 0 : i32
    %210 = vector.shape_cast %101 : vector<1x128xi32> to vector<1x128xi32>
    %211 = vector.broadcast %210 : vector<1x128xi32> to vector<18x128xi32>
    %212 = vector.broadcast %c0_i32_70 : i32 to vector<18x128xi32>
    %213 = arith.select %209, %211, %212 : vector<18x128xi1>, vector<18x128xi32>
    %214 = arith.addi %207, %213 : vector<18x128xi32>
    %c10_i32 = arith.constant 10 : i32
    %215 = vector.broadcast %c10_i32 : i32 to vector<18x128xi32>
    %216 = arith.cmpi eq, %122, %215 : vector<18x128xi32>
    %c0_i32_71 = arith.constant 0 : i32
    %217 = vector.shape_cast %104 : vector<1x128xi32> to vector<1x128xi32>
    %218 = vector.broadcast %217 : vector<1x128xi32> to vector<18x128xi32>
    %219 = vector.broadcast %c0_i32_71 : i32 to vector<18x128xi32>
    %220 = arith.select %216, %218, %219 : vector<18x128xi1>, vector<18x128xi32>
    %221 = arith.addi %214, %220 : vector<18x128xi32>
    %c16_i32 = arith.constant 16 : i32
    %222 = vector.broadcast %c16_i32 : i32 to vector<18x128xi32>
    %223 = arith.cmpi eq, %122, %222 : vector<18x128xi32>
    %c0_i32_72 = arith.constant 0 : i32
    %224 = vector.shape_cast %107 : vector<1x128xi32> to vector<1x128xi32>
    %225 = vector.broadcast %224 : vector<1x128xi32> to vector<18x128xi32>
    %226 = vector.broadcast %c0_i32_72 : i32 to vector<18x128xi32>
    %227 = arith.select %223, %225, %226 : vector<18x128xi1>, vector<18x128xi32>
    %228 = arith.addi %221, %227 : vector<18x128xi32>
    %c5_i32_73 = arith.constant 5 : i32
    %229 = vector.broadcast %c5_i32_73 : i32 to vector<18x128xi32>
    %230 = arith.cmpi eq, %122, %229 : vector<18x128xi32>
    %c0_i32_74 = arith.constant 0 : i32
    %231 = vector.shape_cast %115 : vector<1x128xi32> to vector<1x128xi32>
    %232 = vector.broadcast %231 : vector<1x128xi32> to vector<18x128xi32>
    %233 = vector.broadcast %c0_i32_74 : i32 to vector<18x128xi32>
    %234 = arith.select %230, %232, %233 : vector<18x128xi1>, vector<18x128xi32>
    %235 = arith.addi %228, %234 : vector<18x128xi32>
    %c11_i32 = arith.constant 11 : i32
    %236 = vector.broadcast %c11_i32 : i32 to vector<18x128xi32>
    %237 = arith.cmpi eq, %122, %236 : vector<18x128xi32>
    %c0_i32_75 = arith.constant 0 : i32
    %238 = vector.shape_cast %118 : vector<1x128xi32> to vector<1x128xi32>
    %239 = vector.broadcast %238 : vector<1x128xi32> to vector<18x128xi32>
    %240 = vector.broadcast %c0_i32_75 : i32 to vector<18x128xi32>
    %241 = arith.select %237, %239, %240 : vector<18x128xi1>, vector<18x128xi32>
    %242 = arith.addi %235, %241 : vector<18x128xi32>
    %c17_i32 = arith.constant 17 : i32
    %243 = vector.broadcast %c17_i32 : i32 to vector<18x128xi32>
    %244 = arith.cmpi eq, %122, %243 : vector<18x128xi32>
    %c0_i32_76 = arith.constant 0 : i32
    %245 = vector.shape_cast %121 : vector<1x128xi32> to vector<1x128xi32>
    %246 = vector.broadcast %245 : vector<1x128xi32> to vector<18x128xi32>
    %247 = vector.broadcast %c0_i32_76 : i32 to vector<18x128xi32>
    %248 = arith.select %244, %246, %247 : vector<18x128xi1>, vector<18x128xi32>
    %249 = arith.addi %242, %248 : vector<18x128xi32>
    %c0_77 = arith.constant 0 : index
    %c0_78 = arith.constant 0 : index
    %c0_79 = arith.constant 0 : index
    %250 = vector.load %arg4[%c0_77, %c0_78, %c0_79] : memref<1x18x128xi32, #tpu.memory_space<vmem>>, vector<1x18x128xi32>
    %251 = vector.shape_cast %250 : vector<1x18x128xi32> to vector<18x128xi32>
    %252 = arith.addi %251, %249 : vector<18x128xi32>
    %c0_80 = arith.constant 0 : index
    %c0_81 = arith.constant 0 : index
    %c0_82 = arith.constant 0 : index
    %253 = vector.load %arg4[%c0_80, %c0_81, %c0_82] : memref<1x18x128xi32, #tpu.memory_space<vmem>>, vector<1x18x128xi32>
    %254 = vector.shape_cast %253 : vector<1x18x128xi32> to vector<18x128xi32>
    %255 = vector.shape_cast %252 : vector<18x128xi32> to vector<1x18x128xi32>
    tpu.vector_store %arg4[%c0_80, %c0_81, %c0_82], %255 {strides = array<i32>} : memref<1x18x128xi32, #tpu.memory_space<vmem>>, vector<1x18x128xi32>,
    return
  }
  func.func @transform_0(%arg0: i32, %arg1: i32) -> (i32, i32, i32, i32) {
    %c0_i32 = arith.constant 0 : i32
    %c0_i32_0 = arith.constant 0 : i32
    %c0_i32_1 = arith.constant 0 : i32
    return %arg0, %c0_i32, %arg1, %c0_i32_0 : i32, i32, i32, i32
  }
  func.func @transform_1(%arg0: i32, %arg1: i32) -> (i32, i32, i32) {
    %c0_i32 = arith.constant 0 : i32
    %c0_i32_0 = arith.constant 0 : i32
    return %arg0, %arg1, %c0_i32 : i32, i32, i32
  }
  func.func @transform_2(%arg0: i32, %arg1: i32) -> (i32, i32, i32) {
    %c0_i32 = arith.constant 0 : i32
    %c0_i32_0 = arith.constant 0 : i32
    %c0_i32_1 = arith.constant 0 : i32
    return %arg0, %c0_i32, %c0_i32_0 : i32, i32, i32
  }
}

</mosaic_0001>

<bundles_post_ra>
// kernel: tpu_custom_call.1
= control target key start
LH: loop header
LB: loop body
LE: loop exit
PB: predicated region body
PF: predicated region fallthrough
CT: control target
= control target key end

     0   :  { %7 = vsyncpa [#allocation3], 0  ;;  %s1170_s0 = inlined_call_operand.hbm [shape: f32[2,6,2,128], index: 0, kind: input, shape index: {}]   ;;  %s1171_s1 = inlined_call_operand.hbm [shape: s32[2,2,128], index: 1, kind: input, shape index: {}]   ;;  %s1172_s2 = inlined_call_operand.vmem [shape: s32[2,18,128], index: 2, kind: output, shape index: {}]  }
   0x1   :  { %9 = vsyncpa [#allocation3 + $0x1], 0 }
   0x2   :  { %10 = vsyncpa [#allocation5], 0 }
   0x3   :  { %12 = vsyncpa [#allocation5 + $0x1], 0  ;;  %s911_s9 = smov 0   ;;  %s913_s10 = smov 0  }
   0x4   :  { %s915_s11 = smov 0   ;;  %s917_s12 = smov 0  }
   0x5   :  { %s919_s13 = smov 0   ;;  %s921_s14 = smov 0  }
   0x6 LB: > { %s693_s15 = sadd.s32 4294967295, %s891_s14   ;;  %s30_s16 = sadd.s32 1, %s887_s13  ;;  %s891_s14 = sphi %s921_s14, %s18_s14   ;;  %s887_s13 = sphi %s919_s13, %s1181_s13   ;;  %s883_s12 = sphi %s917_s12, %s1180_s12   ;;  %s879_s11 = sphi %s915_s11, %s1179_s11   ;;  %s875_s10 = sphi %s913_s10, %s1178_s10   ;;  %s871_s9 = sphi %s911_s9, %s1177_s9  }
   0x7   : > { %p32_p0 = scmp.ge.s32.totalorder %s30_s16, 2  ;;  %s39_s17 = sadd.s32 1, %s879_s11 }
   0x8   : > { %p46_p1 = scmp.ne.s32.totalorder %s879_s11, %s875_s10  ;;  %p47_p2 = scmp.eq.s32.totalorder %s891_s14, 0 }
   0x9   : > { %s1183_s16 = smov (%p32_p0, %s30_s16), 0  ;;  %p52_p4 = scmp.ne.s32.totalorder %s875_s10, %s871_s9 }
   0xa   : > { %p48_p3 = por %p47_p2, %p46_p1  ;;  %s34_s18 = ssub.s32 %s887_s13, %s1183_s16 }
   0xb   : > { %p53_p5 = scmp.eq.s32.totalorder %s693_s15, 0  ;;  %p37_p6 = scmp.eq.s32.totalorder %s34_s18, 0 }
   0xc   : > { %p725_p8 = scmp.lt.s32.totalorder %s891_s14, 2  ;;  %s130_s21 = sand.u32 1, %s879_s11  }
   0xd   : > { %p950_p7 = por %p53_p5, %p52_p4  ;;  %s711_s22 = smul.u32 12, %s887_s13 }
   0xe   : > { %s956_s20 = scalar_select %p37_p6, %s879_s11, %s39_s17  }
   0xf   : > { %s710_s23 = smul.u32 12, %s130_s21  ;;  %s140_s26 = scalar_lea.hbm %s1170_s0, %s711_s22 }
  0x10   : > { %p963_p9 = pnand %p725_p8, %p48_p3  ;;  %s141_s28 = sshll.u32 %s140_s26, 4  ;;  %s142_s28 = int_to_ptr.hbm [resolvable:$true] %s141_s28 }
  0x11   : > { %s134_s29 = scalar_lea.vmem [#allocation2], %s710_s23  ;;  %s131_s3 = scalar_lea.sflag [#allocation3], %s130_s21 }
  0x12   : > { %s143_s30 = sshll.u32 %s134_s29, 4  ;;  %s893_s4 = smov 32   ;;  %s144_s30 = int_to_ptr.vmem [resolvable:$true] %s143_s30 }
  0x13   : > { %s894_s5 = smov 2   ;;  %p700_p10 = scmp.ge.s32.totalorder %s891_s14, 1 }
  0x14   : > { %721 = dma.hbm_to_vmem [thread:$0]  (!%p963_p9), %s142_s28, 192, %s144_s30, %s131_s3, %s893_s4, %s893_s4, %s894_s5  }
  0x15   : > { %p171_p11 = scmp.lt.s32.totalorder %s891_s14, 3  ;;  %s698_s6 = sshll.u32 %s130_s21, 1 }
  0x16   : > { %s699_s7 = sshll.u32 %s887_s13, 1  ;;  %s157_s8 = scalar_lea.vmem [#allocation4], %s698_s6 }
  0x17   : > { %p172_p12 = pnand %p700_p10, %p171_p11  ;;  %s166_s9 = sshll.u32 %s157_s8, 4  ;;  %s167_s9 = int_to_ptr.vmem [resolvable:$true] %s166_s9 }
  0x18   : > { %s162_s18 = scalar_lea.hbm %s1171_s1, %s699_s7  ;;  %s154_s23 = scalar_lea.sflag [#allocation5], %s130_s21 }
  0x19   : > { %s164_s22 = sshll.u32 %s162_s18, 4  ;;  %175 = sbr.rel (%p172_p12) target bundleno = 106 (0x6a), region = 28  ;;  %s165_s22 = int_to_ptr.hbm [resolvable:$true] %s164_s22 }
  0x1a   : > { %724 = dma.hbm_to_vmem [thread:$0]  (!%p963_p9), %s165_s22, 32, %s167_s9, %s154_s23  }
  0x1b   : > { %s177_s24 = sand.u32 (!%p172_p12), 1, %s875_s10  }
  0x1c   : > { %s712_s25 = smul.u32 (!%p172_p12), 12, %s177_s24  ;;  %s178_s26 = scalar_lea.sflag (!%p172_p12), [#allocation3], %s177_s24 }
  0x1e   : > { %s978_s28 = scalar_lea.vmem [#allocation2], %s712_s25 }
  0x1f   : > { %862 = dma.done.wait (%p950_p7), %s178_s26, 192  }
  0x20   : > { %864 = vsyncadd (%p950_p7), %s178_s26, 4294967104  ;;  %s701_s29 = sshll.u32 %s177_s24, 1  ;;  %s188_s30 = scalar_lea.sflag [#allocation5], %s177_s24 }
  0x21   : > { %s191_s3 = scalar_lea.vmem [#allocation4], %s701_s29 }
  0x22   : > { %866 = dma.done.wait (%p950_p7), %s188_s30, 32  }
  0x23   : > { %868 = vsyncadd (%p950_p7), %s188_s30, 4294967264  ;;  %p218_p13 = scmp.lt.s32.totalorder %s883_s12, 1  ;;  %v895_v0 = vmov 0   ;;  %v230_v1 = vld [vmem:[%s978_s28] sm:$0x3]  ;;  %v420_v4 = vlaneseq  ;;  %vm261_vm3 = vcmask 1041408  }
  0x24   : > { %v703_v2 = vld [vmem:[%s978_s28 + $0x2] sm:$0x3]  ;;  %v704_v3 = vld [vmem:[%s978_s28 + $0x4] sm:$0x3]  ;;  %v705_v7 = vld [vmem:[%s978_s28 + $0x6] sm:$0x3] }
  0x25   : > { %s1185_s12 = smov (!%p218_p13, %s883_s12), 1  ;;  %vm233_vm0 = vcmp.gt.f32.partialorder %v703_v2, %v230_v1  ;;  %v1002_v8 = vld [vmem:[%s191_s3] sm:$0x3]  ;;  %v706_v11 = vld [vmem:[%s978_s28 + $0x8] sm:$0x3]  ;;  %v1009_v12 = vshrl.u32 %v420_v4, 7 }
  0x26   : > { %s713_s21 = smul.u32 24, %s1185_s12  ;;  %v234_v5 = vsel %vm233_vm0, 1, %v895_v0  ;;  %v235_v6 = vsel %vm233_vm0, %v703_v2, %v230_v1  ;;  %vm258_vm2 = vcmp.eq.s32.totalorder %v1002_v8, 0  ;;  %vm286_vm4 = vcmp.eq.s32.totalorder %v1002_v8, 1  ;;  %v707_v15 = vld [vmem:[%s978_s28 + $0xa] sm:$0x3] }
  0x27   : > { %vm238_vm1 = vcmp.gt.f32.partialorder %v704_v3, %v235_v6  ;;  %vm313_vm5 = vcmp.eq.s32.totalorder %v1002_v8, 2  ;;  %vm340_vm7 = vcmp.eq.s32.totalorder %v1002_v8, 3  ;;  %vm367_vm8 = vcmp.eq.s32.totalorder %v1002_v8, 4 }
  0x28   : > { %s993_s5 = scalar_lea.vmem %s1172_s2, %s713_s21  ;;  %v239_v9 = vsel %vm238_vm1, 2, %v234_v5  ;;  %v240_v10 = vsel %vm238_vm1, %v704_v3, %v235_v6  ;;  %v277_v16 = vsel %vm258_vm2, 1, %v895_v0  ;;  %v304_v18 = vsel %vm286_vm4, 1, %v895_v0 }
  0x29   : > { %229 = vst [vmem:[%s993_s5 + $0x10] sm:$0x3] %v895_v0  ;;  %vm243_vm6 = vcmp.gt.f32.partialorder %v705_v7, %v240_v10  ;;  %v278_v17 = vsel %vm261_vm3, %v277_v16, 0  ;;  %v331_v19 = vsel %vm313_vm5, 1, %v895_v0  ;;  %v305_v23 = vsel %vm261_vm3, %v304_v18, 0 }
  0x2a   : > { %v244_v13 = vsel %vm243_vm6, 3, %v239_v9  ;;  %v245_v14 = vsel %vm243_vm6, %v705_v7, %v240_v10  ;;  %v279_v22 = vrot.slane %v278_v17, 4  ;;  %v306_v24 = vrot.slane %v305_v23, 4 }
  0x2b   : > { %vm248_vm9 = vcmp.gt.f32.partialorder %v706_v11, %v245_v14  ;;  %v1025_v25 = vsel %vm261_vm3, %v331_v19, 0  ;;  %v358_v26 = vsel %vm340_vm7, 1, %v895_v0  ;;  %vm394_vm11 = vcmp.eq.s32.totalorder %v1002_v8, 5 }
  0x2c   : > { %v249_v20 = vsel %vm248_vm9, 4, %v244_v13  ;;  %v250_v21 = vsel %vm248_vm9, %v706_v11, %v245_v14  ;;  %v280_v28 = vadd.s32 %v279_v22, %v278_v17  ;;  %v333_v29 = vrot.slane %v1025_v25, 4 }
  0x2d   : > { %vm253_vm10 = vcmp.gt.f32.partialorder %v707_v15, %v250_v21  ;;  %v1042_v31 = vadd.s32 %v306_v24, %v305_v23  ;;  %v1051_v35 = vsel %vm261_vm3, %v358_v26, 0  ;;  %vm457_vm6 = vcmp.eq.s32.totalorder %v1009_v12, 7 }
  0x2e   : > { %v1030_v27 = vsel %vm253_vm10, 5, %v249_v20  ;;  %v281_v34 = vrot.slane %v280_v28, 2  ;;  %vm424_vm9 = vcmp.eq.s32.totalorder %v1009_v12, 0 }
  0x2f   : > { %vm1036_vm12 = vcmp.eq.s32.totalorder %v1030_v27, %v1002_v8  ;;  %vm257_vm13 = vcmp.eq.s32.totalorder %v1030_v27, 0  ;;  %vm285_vm14 = vcmp.eq.s32.totalorder %v1030_v27, 1  ;;  %v308_v39 = vrot.slane %v1042_v31, 2 }
  0x30   : > { %vm259_vm15 = vmand %vm258_vm2, %vm1036_vm12  ;;  %v269_v32 = vsel %vm257_vm13, 1, %v895_v0  ;;  %v296_v33 = vsel %vm285_vm14, 1, %v895_v0  ;;  %v1075_v47 = vadd.s32 %v281_v34, %v280_v28  ;;  %vm475_vm13 = vcmp.eq.s32.totalorder %v1009_v12, 2 }
  0x31   : > { %v260_v36 = vsel %vm259_vm15, 1, %v895_v0  ;;  %v270_v37 = vsel %vm261_vm3, %v269_v32, 0  ;;  %vm287_vm0 = vmand %vm286_vm4, %vm1036_vm12  ;;  %v297_v38 = vsel %vm261_vm3, %v296_v33, 0  ;;  %vm430_vm4 = vcmp.eq.s32.totalorder %v1009_v12, 6 }
  0x32   : > { %v262_v40 = vsel %vm261_vm3, %v260_v36, 0  ;;  %v271_v41 = vrot.slane %v270_v37, 4  ;;  %v288_v42 = vsel %vm287_vm0, 1, %v895_v0  ;;  %v298_v43 = vrot.slane %v297_v38, 4  ;;  %vm314_vm1 = vmand %vm313_vm5, %vm1036_vm12 }
  0x33   : > { %v263_v44 = vrot.slane %v262_v40, 4  ;;  %v289_v45 = vsel %vm261_vm3, %v288_v42, 0  ;;  %v315_v46 = vsel %vm314_vm1, 1, %v895_v0  ;;  %vm341_vm2 = vmand %vm340_vm7, %vm1036_vm12  ;;  %vm448_vm7 = vcmp.eq.s32.totalorder %v1009_v12, 1 }
  0x34   : > { %v272_v48 = vadd.s32 %v271_v41, %v270_v37  ;;  %v290_v49 = vrot.slane %v289_v45, 4  ;;  %v299_v50 = vadd.s32 %v298_v43, %v297_v38  ;;  %v316_v51 = vsel %vm261_vm3, %v315_v46, 0  ;;  %vm368_vm5 = vmand %vm367_vm8, %vm1036_vm12 }
  0x35   : > { %v264_v52 = vadd.s32 %v263_v44, %v262_v40  ;;  %v317_v53 = vrot.slane %v316_v51, 4  ;;  %v342_v54 = vsel %vm341_vm2, 1, %v895_v0  ;;  %v369_v55 = vsel %vm368_vm5, 1, %v895_v0  ;;  %vm395_vm10 = vmand %vm394_vm11, %vm1036_vm12 }
  0x36   : > { %v273_v56 = vrot.slane %v272_v48, 2  ;;  %v291_v57 = vadd.s32 %v290_v49, %v289_v45  ;;  %v300_v58 = vrot.slane %v299_v50, 2  ;;  %v343_v59 = vsel %vm261_vm3, %v342_v54, 0 }
  0x37   : > { %v265_v60 = vrot.slane %v264_v52, 2  ;;  %v318_v61 = vadd.s32 %v317_v53, %v316_v51  ;;  %v344_v62 = vrot.slane %v343_v59, 4  ;;  %v370_v63 = vsel %vm261_vm3, %v369_v55, 0 }
  0x38   : > { %vm312_vm14 = vcmp.eq.s32.totalorder %v1030_v27, 2  ;;  %v274_v1 = vadd.s32 %v273_v56, %v272_v48  ;;  %v292_v2 = vrot.slane %v291_v57, 2  ;;  %v301_v3 = vadd.s32 %v300_v58, %v299_v50 }
  0x39   : > { %v371_v4 = vrot.slane %v370_v63, 4  ;;  %vm502_vm15 = vcmp.eq.s32.totalorder %v1009_v12, 3  ;;  %v266_v5 = vadd.s32 %v265_v60, %v264_v52  ;;  %v319_v6 = vrot.slane %v318_v61, 2 }
  0x3a   : > { %v345_v7 = vadd.s32 %v344_v62, %v343_v59  ;;  %v396_v9 = vsel %vm395_vm10, 1, %v895_v0  ;;  %vm529_vm12 = vcmp.eq.s32.totalorder %v1009_v12, 4  ;;  %v275_v10 = vrot.slane %v274_v1, 1 }
  0x3b   : > { %v293_v11 = vadd.s32 %v292_v2, %v291_v57  ;;  %v302_v13 = vrot.slane %v301_v3, 1  ;;  %v372_v14 = vadd.s32 %v371_v4, %v370_v63  ;;  %v267_v15 = vrot.slane %v266_v5, 1 }
  0x3c   : > { %v320_v16 = vadd.s32 %v319_v6, %v318_v61  ;;  %v346_v17 = vrot.slane %v345_v7, 2  ;;  %v397_v18 = vsel %vm261_vm3, %v396_v9, 0  ;;  %v276_v19 = vadd.s32 %v275_v10, %v274_v1 }
  0x3d   : > { %v294_v20 = vrot.slane %v293_v11, 1  ;;  %v303_v21 = vadd.s32 %v302_v13, %v301_v3  ;;  %v373_v22 = vrot.slane %v372_v14, 2  ;;  %v268_v23 = vadd.s32 %v267_v15, %v266_v5 }
  0x3e   : > { %v321_v24 = vrot.slane %v320_v16, 1  ;;  %v347_v26 = vadd.s32 %v346_v17, %v345_v7  ;;  %v398_v28 = vrot.slane %v397_v18, 4  ;;  %v433_v33 = vsel %vm430_vm4, %v276_v19, 0 }
  0x3f   : > { %v295_v30 = vadd.s32 %v294_v20, %v293_v11  ;;  %v374_v32 = vadd.s32 %v373_v22, %v372_v14  ;;  %v460_v34 = vsel %vm457_vm6, %v303_v21, 0  ;;  %vm556_vm0 = vcmp.eq.s32.totalorder %v1009_v12, 5 }
  0x40   : > { %v322_v36 = vadd.s32 %v321_v24, %v320_v16  ;;  %v348_v37 = vrot.slane %v347_v26, 1  ;;  %v399_v38 = vadd.s32 %v398_v28, %v397_v18  ;;  %v427_v40 = vsel %vm424_vm9, %v268_v23, 0 }
  0x41   : > { %v375_v41 = vrot.slane %v374_v32, 1  ;;  %v436_v42 = vadd.s32 %v433_v33, %v427_v40  ;;  %v451_v43 = vsel %vm448_vm7, %v295_v30, 0  ;;  %v283_v44 = vrot.slane %v1075_v47, 1 }
  0x42   : > { %v349_v45 = vadd.s32 %v348_v37, %v347_v26  ;;  %v400_v46 = vrot.slane %v399_v38, 2  ;;  %v478_v48 = vsel %vm475_vm13, %v322_v36, 0  ;;  %v309_v49 = vadd.s32 %v308_v39, %v1042_v31 }
  0x43   : > { %v376_v50 = vadd.s32 %v375_v41, %v374_v32  ;;  %v454_v51 = vadd.s32 %v451_v43, %v436_v42  ;;  %v284_v52 = vadd.s32 %v283_v44, %v1075_v47  ;;  %v323_v53 = vsel %vm312_vm14, 1, %v895_v0 }
  0x44   : > { %v401_v54 = vadd.s32 %v400_v46, %v399_v38  ;;  %v505_v55 = vsel %vm502_vm15, %v349_v45, 0  ;;  %v310_v56 = vrot.slane %v309_v49, 1  ;;  %v324_v57 = vsel %vm261_vm3, %v323_v53, 0 }
  0x45   : > { %v463_v58 = vadd.s32 %v460_v34, %v454_v51  ;;  %v532_v59 = vsel %vm529_vm12, %v376_v50, 0  ;;  %v325_v31 = vrot.slane %v324_v57, 4  ;;  %v334_v39 = vadd.s32 %v333_v29, %v1025_v25 }
  0x46   : > { %v402_v47 = vrot.slane %v401_v54, 1  ;;  %v311_v60 = vadd.s32 %v310_v56, %v309_v49  ;;  %vm339_vm1 = vcmp.eq.s32.totalorder %v1030_v27, 3  ;;  %v360_v61 = vrot.slane %v1051_v35, 4 }
  0x47   : > { %v481_v62 = vadd.s32 %v478_v48, %v463_v58  ;;  %v326_v63 = vadd.s32 %v325_v31, %v324_v57  ;;  %v335_v1 = vrot.slane %v334_v39, 2  ;;  %v350_v2 = vsel %vm339_vm1, 1, %v895_v0 }
  0x48   : > { %v403_v3 = vadd.s32 %v402_v47, %v401_v54  ;;  %v351_v4 = vsel %vm261_vm3, %v350_v2, 0  ;;  %v361_v5 = vadd.s32 %v360_v61, %v1051_v35  ;;  %vm366_vm2 = vcmp.eq.s32.totalorder %v1030_v27, 4 }
  0x49   : > { %v508_v6 = vadd.s32 %v505_v55, %v481_v62  ;;  %v327_v25 = vrot.slane %v326_v63, 2  ;;  %v336_v29 = vadd.s32 %v335_v1, %v334_v39  ;;  %v352_v7 = vrot.slane %v351_v4, 4 }
  0x4a   : > { %v559_v9 = vsel %vm556_vm0, %v403_v3, 0  ;;  %v362_v10 = vrot.slane %v361_v5, 2  ;;  %v377_v11 = vsel %vm366_vm2, 1, %v895_v0  ;;  %vm393_vm4 = vcmp.eq.s32.totalorder %v1030_v27, 5 }
  0x4b   : > { %v535_v13 = vadd.s32 %v532_v59, %v508_v6  ;;  %v328_v14 = vadd.s32 %v327_v25, %v326_v63  ;;  %v337_v15 = vrot.slane %v336_v29, 1  ;;  %v353_v16 = vadd.s32 %v352_v7, %v351_v4 }
  0x4c   : > { %v363_v17 = vadd.s32 %v362_v10, %v361_v5  ;;  %v378_v35 = vsel %vm261_vm3, %v377_v11, 0  ;;  %v404_v18 = vsel %vm393_vm4, 1, %v895_v0  ;;  %v422_v19 = vadd.s32 8, %v1009_v12 }
  0x4d   : > { %v562_v20 = vadd.s32 %v559_v9, %v535_v13  ;;  %v329_v21 = vrot.slane %v328_v14, 1  ;;  %v338_v22 = vadd.s32 %v337_v15, %v336_v29  ;;  %v354_v23 = vrot.slane %v353_v16, 2  ;;  %v585_v15 = vld [vmem:[%s993_s5 + $0x10] sm:$0x3] }
  0x4e   : > { %v364_v24 = vrot.slane %v363_v17, 1  ;;  %v379_v26 = vrot.slane %v378_v35, 4  ;;  %v405_v27 = vsel %vm261_vm3, %v404_v18, 0  ;;  %vm440_vm6 = vcmp.eq.s32.totalorder %v422_v19, 12 }
  0x4f   : > { %v330_v28 = vadd.s32 %v329_v21, %v328_v14  ;;  %v355_v30 = vadd.s32 %v354_v23, %v353_v16  ;;  %v406_v32 = vrot.slane %v405_v27, 4  ;;  %v443_v36 = vsel %vm440_vm6, %v284_v52, 0  ;;  %589 = vst [vmem:[%s993_s5] sm:$0xff] %v562_v20 }
  0x50   : > { %v365_v33 = vadd.s32 %v364_v24, %v363_v17  ;;  %v380_v34 = vadd.s32 %v379_v26, %v378_v35  ;;  %vm467_vm5 = vcmp.eq.s32.totalorder %v422_v19, 13  ;;  %vm485_vm9 = vcmp.eq.s32.totalorder %v422_v19, 8 }
  0x51   : > { %v356_v37 = vrot.slane %v355_v30, 1  ;;  %v407_v38 = vadd.s32 %v406_v32, %v405_v27  ;;  %v470_v40 = vsel %vm467_vm5, %v311_v60, 0  ;;  %v488_v43 = vsel %vm485_vm9, %v330_v28, 0 }
  0x52   : > { %v381_v41 = vrot.slane %v380_v34, 2  ;;  %v473_v42 = vadd.s32 %v470_v40, %v443_v36  ;;  %vm494_vm7 = vcmp.eq.s32.totalorder %v422_v19, 14  ;;  %vm512_vm10 = vcmp.eq.s32.totalorder %v422_v19, 9 }
  0x53   : > { %v357_v44 = vadd.s32 %v356_v37, %v355_v30  ;;  %v408_v45 = vrot.slane %v407_v38, 2  ;;  %v497_v46 = vsel %vm494_vm7, %v338_v22, 0  ;;  %vm521_vm13 = vcmp.eq.s32.totalorder %v422_v19, 15 }
  0x54   : > { %v382_v48 = vadd.s32 %v381_v41, %v380_v34  ;;  %v491_v49 = vadd.s32 %v488_v43, %v473_v42  ;;  %v524_v52 = vsel %vm521_vm13, %v365_v33, 0  ;;  %vm539_vm14 = vcmp.eq.s32.totalorder %v422_v19, 10 }
  0x55   : > { %v409_v50 = vadd.s32 %v408_v45, %v407_v38  ;;  %v515_v51 = vsel %vm512_vm10, %v357_v44, 0  ;;  %v385_v55 = vsel %vm367_vm8, 1, %v895_v0  ;;  %v412_v56 = vsel %vm394_vm11, 1, %v895_v0 }
  0x56   : > { %v383_v53 = vrot.slane %v382_v48, 1  ;;  %v500_v54 = vadd.s32 %v497_v46, %v491_v49  ;;  %vm566_vm15 = vcmp.eq.s32.totalorder %v422_v19, 11  ;;  %v386_v58 = vsel %vm261_vm3, %v385_v55, 0 }
  0x57   : > { %v410_v57 = vrot.slane %v409_v50, 1  ;;  %v413_v59 = vsel %vm261_vm3, %v412_v56, 0  ;;  %v387_v47 = vrot.slane %v386_v58, 4  ;;  %v423_v5 = vadd.s32 16, %v1009_v12 }
  0x58   : > { %v384_v31 = vadd.s32 %v383_v53, %v382_v48  ;;  %v518_v39 = vadd.s32 %v515_v51, %v500_v54  ;;  %v414_v60 = vrot.slane %v413_v59, 4 }
  0x59   : > { %v411_v61 = vadd.s32 %v410_v57, %v409_v50  ;;  %v388_v1 = vadd.s32 %v387_v47, %v386_v58  ;;  %vm549_vm3 = vcmp.eq.s32.totalorder %v423_v5, 16  ;;  %vm576_vm8 = vcmp.eq.s32.totalorder %v423_v5, 17 }
  0x5a   : > { %v527_v62 = vadd.s32 %v524_v52, %v518_v39  ;;  %v542_v63 = vsel %vm539_vm14, %v384_v31, 0  ;;  %v415_v2 = vadd.s32 %v414_v60, %v413_v59 }
  0x5b   : > { %v569_v3 = vsel %vm566_vm15, %v411_v61, 0  ;;  %v389_v0 = vrot.slane %v388_v1, 2 }
  0x5c   : > { %v545_v4 = vadd.s32 %v542_v63, %v527_v62  ;;  %v416_v8 = vrot.slane %v415_v2, 2 }
  0x5d   : > { %v390_v25 = vadd.s32 %v389_v0, %v388_v1 }
  0x5e   : > { %v572_v6 = vadd.s32 %v569_v3, %v545_v4  ;;  %v417_v29 = vadd.s32 %v416_v8, %v415_v2 }
  0x5f   : > { %v391_v7 = vrot.slane %v390_v25, 1 }
  0x60   : > { %v418_v9 = vrot.slane %v417_v29, 1  ;;  %590 = vst [vmem:[%s993_s5 + $0x8] sm:$0xff] %v572_v6 }
  0x61   : > { %v392_v10 = vadd.s32 %v391_v7, %v390_v25 }
  0x62   : > { %v419_v11 = vadd.s32 %v418_v9, %v417_v29 }
  0x63   : > { %v552_v13 = vsel %vm549_vm3, %v392_v10, 0 }
  0x64   : > { %v579_v14 = vsel %vm576_vm8, %v419_v11, 0 }
  0x65   : > { %v582_v16 = vadd.s32 %v579_v14, %v552_v13 }
  0x67   : > { %v588_v17 = vadd.s32 %v585_v15, %v582_v16 }
  0x69   : > { %591 = vst [vmem:[%s993_s5 + $0x10] sm:$0x3] %v588_v17 }
  0x6a PF: > { %s18_s14 = sadd.s32 1, %s891_s14   ;;  %s1177_s9 = smov %s875_s10 }
  0x6b   : > { %p15_p0 = scmp.ge.s32.totalorder %s18_s14, 4   ;;  %s1178_s10 = smov %s879_s11 }
  0x6c   : > { %s1179_s11 = smov %s956_s20  ;;  %s1180_s12 = smov %s887_s13 }
  0x6d   : > { %s1181_s13 = smov %s1183_s16  ;;  %17 = sbr.rel (!%p15_p0) target bundleno = 6 (0x6), region = 90 }
  0x72   :  { %613 = vsyncpa [#allocation3], 1 }
  0x73   :  { %615 = vsyncpa [#allocation3 + $0x1], 1 }
  0x74   :  { %616 = vsyncpa [#allocation5], 1 }
  0x75   :  { %618 = vsyncpa [#allocation5 + $0x1], 1 }

</bundles_post_ra>
